<compile_context>
chip_gen: v6e
topology: v6e:2x2x1
jax: 0.10.0
libtpu: 0.0.40
codegen_flags: <defaults>
</compile_context>

<pallas_src>
import jax
import jax.numpy as jnp
from jax.experimental import pallas as pl
from jax.experimental.pallas import tpu as pltpu

_LANE = 128  # TPU lane width (last-dim tile granularity)

_WEIGHT_SINGLE_BUFFER = True  # flipped off once if pl.Buffered(1) is rejected


def _round_up(n, m):
    return (n + m - 1) // m * m


def _sublanes(dtype):
    # Sublane granularity of the second-minor dim: 8 (f32), 16 (bf16), 32 (int8/fp8).
    return 8 * max(1, 4 // jnp.dtype(dtype).itemsize)


def _pad_2d(a, rows, cols, dtype):
    """Zero-pad / cast `a` to (rows, cols) of `dtype`; no-op if already in that form."""
    if a.ndim == 2 and a.shape == (rows, cols) and a.dtype == jnp.dtype(dtype):
        return a
    out = jnp.zeros((rows, cols), dtype)
    return out.at[: a.shape[0], : a.shape[1]].set(a.astype(dtype))


def _pad_bias(b, cols):
    """Return bias as an f32 (1, cols) row; no-op if already in that form."""
    if b.ndim == 2 and b.shape == (1, cols) and b.dtype == jnp.float32:
        return b
    out = jnp.zeros((1, cols), jnp.float32)
    return out.at[0, : b.size].set(b.astype(jnp.float32).reshape(-1))


def prepare_roberta_head_params(w_dense, b_dense, w_out, b_out, *,
                                compute_dtype=jnp.bfloat16):
    """Pad + cast the head parameters ONCE (e.g. at model-load time).

    Returns (w_dense_p, b_dense_p, w_out_p, b_out_p, num_labels).  Feeding these
    back into roberta_classification_head (with num_labels=...) makes the per-call
    wrapper copy-free for the dominant HxH weight stream.
    """
    H = w_dense.shape[0]
    L = w_out.shape[1]
    Hp = _round_up(max(H, _LANE), _LANE)
    Lp = _round_up(max(L, _LANE), _LANE)
    return (_pad_2d(w_dense, Hp, Hp, compute_dtype),
            _pad_bias(b_dense, Hp),
            _pad_2d(w_out, Hp, Lp, compute_dtype),
            _pad_bias(b_out, Lp),
            L)


def roberta_classification_head(x, w_dense, b_dense, w_out, b_out, *,
                                num_labels=None, block_b=None, hidden_chunk=256,
                                compute_dtype=jnp.bfloat16, out_dtype=None):
    """RobertaClassificationHead.forward (eval mode: dropout == identity).

    x:        [B, H]
    w_dense:  [H, H]  stored (in, out); pre-padded [Hp, Hp] also accepted
    b_dense:  [H]     (or pre-padded f32 [1, Hp])
    w_out:    [H, L]  (pre-padded [Hp, Lp] accepted - then pass num_labels)
    b_out:    [L]     (or pre-padded f32 [1, Lp])
    Returns logits [B, num_labels] in out_dtype (default: x.dtype).
    """
    B = x.shape[0]
    L = int(num_labels) if num_labels is not None else int(w_out.shape[1])
    out_dtype = x.dtype if out_dtype is None else jnp.dtype(out_dtype)

    Hp = _round_up(max(w_dense.shape[0], _LANE), _LANE)
    Lp = _round_up(max(w_out.shape[1], _LANE), _LANE)

    cbytes = jnp.dtype(compute_dtype).itemsize
    obytes = jnp.dtype(out_dtype).itemsize
    sub = max(_sublanes(compute_dtype), _sublanes(out_dtype))

    # ---- batch tiling -------------------------------------------------------
    if block_b is None:
        block_b = 256 if B >= 512 else 128          # bigger tiles amortize step cost
    block_b = max(sub, _round_up(block_b, sub))
    # Expose >=2 tiles whenever the batch can be split on sublane granularity so
    # dimension_semantics=("parallel",) can shard across v7x's two TensorCores, and
    # rebalance TB so the last tile is not mostly padding (e.g. B=129 -> TB=80x2).
    n_tiles = max(pl.cdiv(B, block_b), 2 if B > sub else 1)
    TB = _round_up(pl.cdiv(B, n_tiles), sub)
    Bp = _round_up(B, TB)
    grid = (Bp // TB,)

    # ---- hidden-dim chunk size (multiple of 128 that divides Hp) -------------
    ck = _LANE
    for cand in (256, 512):
        if cand <= hidden_chunk and Hp % cand == 0:
            ck = cand
    num_chunks = Hp // ck

    # ---- pad / cast only when needed (prepared params pass straight through) --
    xp = _pad_2d(x, Bp, Hp, compute_dtype)
    w1p = _pad_2d(w_dense, Hp, Hp, compute_dtype)
    w2p = _pad_2d(w_out, Hp, Lp, compute_dtype)
    b1p = _pad_bias(b_dense, Hp)
    b2p = _pad_bias(b_out, Lp)

    cost = pl.CostEstimate(
        flops=2 * Bp * Hp * Hp + 2 * Bp * Hp * Lp,
        transcendentals=Bp * Hp,
        bytes_accessed=(xp.size + w1p.size + w2p.size) * cbytes
        + (b1p.size + b2p.size) * 4
        + Bp * Lp * obytes,
    )

    def kernel(x_ref, w1_ref, b1_ref, w2_ref, b2_ref, o_ref, acc_ref):
        # dropout (eval mode) == identity, elided.
        xt = x_ref[...]                              # [TB, Hp] compute_dtype
        acc_ref[...] = jnp.zeros_like(acc_ref)
        # Statically unrolled chunk loop (static ref slices -> guaranteed lowering):
        # each chunk's [TB, ck] intermediate dies right after feeding the second
        # matmul, so the live footprint stays small and tanh (EUP) / bias-add (VPU)
        # overlap the MXU pushes of neighboring chunks.
        for c in range(num_chunks):
            lo = c * ck
            h = jnp.dot(xt, w1_ref[:, lo:lo + ck],
                        preferred_element_type=jnp.float32)     # MXU1, f32 accum
            h = jnp.tanh(h + b1_ref[:, lo:lo + ck])             # f32 bias + tanh
            acc_ref[...] += jnp.dot(h.astype(w2_ref.dtype),
                                    w2_ref[lo:lo + ck, :],
                                    preferred_element_type=jnp.float32)  # MXU2
        # dropout (eval mode) == identity, elided.
        o_ref[...] = (acc_ref[...] + b2_ref[...]).astype(o_ref.dtype)  # lane-dense

    def _run(single_buffer):
        if single_buffer:
            def resident(shape):
                return pl.BlockSpec(shape, lambda i: (0, 0),
                                    pipeline_mode=pl.Buffered(1))
        else:
            def resident(shape):
                return pl.BlockSpec(shape, lambda i: (0, 0))

        wbuf = 1 if single_buffer else 2
        vmem_need = (2 * TB * Hp * cbytes                  # double-buffered x tiles
                     + 2 * TB * Lp * obytes                # double-buffered out tiles
                     + wbuf * (Hp * Hp + Hp * Lp) * cbytes   # resident weights
                     + wbuf * (Hp + Lp) * 4                # resident biases (f32)
                     + TB * Lp * 4                         # f32 accumulator scratch
                     + TB * ck * (4 + cbytes))             # live h chunk (+ cast)
        vmem_limit = None
        if vmem_need > 12 * (1 << 20):        # v5e default scoped limit is only 16 MiB
            try:
                phys = pltpu.get_tpu_info().vmem_capacity_bytes
            except Exception:
                phys = 64 * (1 << 20)          # conservative: v7x per-core VMEM
            cap = min(48 * (1 << 20), phys * 3 // 4)
            vmem_limit = min(max(vmem_need * 3 // 2, 16 * (1 << 20)), cap)

        return pl.pallas_call(
            kernel,
            out_shape=jax.ShapeDtypeStruct((Bp, Lp), out_dtype),
            grid_spec=pltpu.PrefetchScalarGridSpec(
                num_scalar_prefetch=0,
                grid=grid,
                in_specs=[
                    pl.BlockSpec((TB, Hp), lambda i: (i, 0)),  # x: pipelined over batch
                    resident((Hp, Hp)),                        # dense weight: resident
                    resident((1, Hp)),                         # dense bias (f32)
                    resident((Hp, Lp)),                        # out_proj weight
                    resident((1, Lp)),                         # out_proj bias (f32)
                ],
                out_specs=pl.BlockSpec((TB, Lp), lambda i: (i, 0)),  # lane-dense out
                scratch_shapes=[pltpu.VMEM((TB, Lp), jnp.float32)],
            ),
            compiler_params=pltpu.CompilerParams(
                dimension_semantics=("parallel",),   # shard batch tiles across TCs
                vmem_limit_bytes=vmem_limit),
            cost_estimate=cost,
        )(xp, w1p, b1p, w2p, b2p)

    global _WEIGHT_SINGLE_BUFFER
    if _WEIGHT_SINGLE_BUFFER:
        try:
            out_padded = _run(True)
        except Exception:
            # This JAX build rejected pl.Buffered(1) on these BlockSpecs; fall back
            # to default double buffering (correct, just uses more VMEM).
            _WEIGHT_SINGLE_BUFFER = False
            out_padded = _run(False)
    else:
        out_padded = _run(False)

    return out_padded[:B, :L]


if __name__ == "__main__":
    # Small config consistent with the module: hidden_size=32, num_labels=4.
    B, H, L = 8, 32, 4
    key = jax.random.PRNGKey(0)
    kx, kw1, kb1, kw2, kb2, kx2 = jax.random.split(key, 6)

    x = jax.random.normal(kx, (B, H), dtype=jnp.float32)
    # PyTorch Linear weights are [out, in]; here stored pre-transposed to [in, out].
    w_dense = jax.random.normal(kw1, (H, H), dtype=jnp.float32) * 0.05
    b_dense = jax.random.normal(kb1, (H,), dtype=jnp.float32) * 0.05
    w_out = jax.random.normal(kw2, (H, L), dtype=jnp.float32) * 0.05
    b_out = jax.random.normal(kb2, (L,), dtype=jnp.float32) * 0.05

    # Reference (dropout = identity at inference).
    ref = jnp.tanh(x @ w_dense + b_dense) @ w_out + b_out

    # 1) Exact-precision path (f32 streaming, raw unpadded params) — tight tolerance.
    out_f32 = roberta_classification_head(
        x, w_dense, b_dense, w_out, b_out, compute_dtype=jnp.float32)
    out_f32 = jax.block_until_ready(out_f32)
    assert out_f32.shape == (B, L)
    assert jnp.allclose(out_f32, ref, atol=1e-5, rtol=1e-5)

    # 2) Performance path: weights pre-padded/cast ONCE, bf16 streaming, f32 accum.
    w1p, b1p, w2p, b2p, nl = prepare_roberta_head_params(
        w_dense, b_dense, w_out, b_out, compute_dtype=jnp.bfloat16)
    out_bf16 = roberta_classification_head(
        x, w1p, b1p, w2p, b2p, num_labels=nl, compute_dtype=jnp.bfloat16)
    out_bf16 = jax.block_until_ready(out_bf16)
    assert out_bf16.shape == (B, L)
    assert jnp.allclose(out_bf16, ref, atol=2e-2, rtol=2e-2)

    # 3) Multi-tile grid path (>=2 sublane-aligned batch tiles, padded batch rows).
    B2 = 48
    x2 = jax.random.normal(kx2, (B2, H), dtype=jnp.float32)
    ref2 = jnp.tanh(x2 @ w_dense + b_dense) @ w_out + b_out
    out2 = roberta_classification_head(
        x2, w1p, b1p, w2p, b2p, num_labels=nl, compute_dtype=jnp.bfloat16)
    out2 = jax.block_until_ready(out2)
    assert out2.shape == (B2, L)
    assert jnp.allclose(out2, ref2, atol=2e-2, rtol=2e-2)

    print("KERNEL_OK")
</pallas_src>

<mosaic_0001>
module attributes {stable_mosaic.version = 11 : i64} {
  func.func @kernel(%arg0: i32, %arg1: memref<8x128xf32, #tpu.memory_space<vmem>>, %arg2: memref<128x128xf32, #tpu.memory_space<vmem>>, %arg3: memref<1x128xf32, #tpu.memory_space<vmem>>, %arg4: memref<128x128xf32, #tpu.memory_space<vmem>>, %arg5: memref<1x128xf32, #tpu.memory_space<vmem>>, %arg6: memref<8x128xf32, #tpu.memory_space<vmem>>, %arg7: memref<8x128xf32, #tpu.memory_space<vmem>>) attributes {dimension_semantics = [#tpu.dimension_semantics<parallel>], iteration_bounds = array<i64: 1>, scalar_prefetch = 0 : i64, scratch_operands = 1 : i64, tpu.core_type = #tpu.core_type<tc>, window_params = [{transform_indices = @transform_0, window_bounds = array<i64: 8, 128>}, {pipeline_mode = #tpu.pipeline_mode<synchronous>, transform_indices = @transform_1, window_bounds = array<i64: 128, 128>}, {pipeline_mode = #tpu.pipeline_mode<synchronous>, transform_indices = @transform_2, window_bounds = array<i64: 1, 128>}, {pipeline_mode = #tpu.pipeline_mode<synchronous>, transform_indices = @transform_3, window_bounds = array<i64: 128, 128>}, {pipeline_mode = #tpu.pipeline_mode<synchronous>, transform_indices = @transform_4, window_bounds = array<i64: 1, 128>}, {transform_indices = @transform_5, window_bounds = array<i64: 8, 128>}]} {
    %c0 = arith.constant 0 : index
    %c0_0 = arith.constant 0 : index
    %0 = vector.load %arg1[%c0, %c0_0] : memref<8x128xf32, #tpu.memory_space<vmem>>, vector<8x128xf32>
    %cst = arith.constant 0.000000e+00 : f32
    %1 = vector.broadcast %cst : f32 to vector<8x128xf32>
    %c0_1 = arith.constant 0 : index
    %c0_2 = arith.constant 0 : index
    %2 = vector.load %arg7[%c0_1, %c0_2] : memref<8x128xf32, #tpu.memory_space<vmem>>, vector<8x128xf32>
    tpu.vector_store %arg7[%c0_1, %c0_2], %1 {strides = array<i32>} : memref<8x128xf32, #tpu.memory_space<vmem>>, vector<8x128xf32>,
    %c0_3 = arith.constant 0 : index
    %c0_4 = arith.constant 0 : index
    %3 = vector.load %arg2[%c0_3, %c0_4] : memref<128x128xf32, #tpu.memory_space<vmem>>, vector<128x128xf32>
    %cst_5 = arith.constant dense<0.000000e+00> : vector<8x128xf32>
    %4 = tpu.matmul %0, %3, %cst_5 {dimension_numbers = #tpu.dot_dimension_numbers<[1], [0], [0], [1], [0, 0, 1, 1], [], []>} : vector<8x128xf32>, vector<128x128xf32>, vector<8x128xf32> -> vector<8x128xf32>
    %c0_6 = arith.constant 0 : index
    %c0_7 = arith.constant 0 : index
    %5 = vector.load %arg3[%c0_6, %c0_7] : memref<1x128xf32, #tpu.memory_space<vmem>>, vector<1x128xf32>
    %6 = vector.broadcast %5 : vector<1x128xf32> to vector<8x128xf32>
    %7 = arith.addf %4, %6 : vector<8x128xf32>
    %8 = math.tanh %7 : vector<8x128xf32>
    %c0_8 = arith.constant 0 : index
    %c0_9 = arith.constant 0 : index
    %9 = vector.load %arg7[%c0_8, %c0_9] : memref<8x128xf32, #tpu.memory_space<vmem>>, vector<8x128xf32>
    %c0_10 = arith.constant 0 : index
    %c0_11 = arith.constant 0 : index
    %10 = vector.load %arg4[%c0_10, %c0_11] : memref<128x128xf32, #tpu.memory_space<vmem>>, vector<128x128xf32>
    %cst_12 = arith.constant dense<0.000000e+00> : vector<8x128xf32>
    %11 = tpu.matmul %8, %10, %cst_12 {dimension_numbers = #tpu.dot_dimension_numbers<[1], [0], [0], [1], [0, 0, 1, 1], [], []>} : vector<8x128xf32>, vector<128x128xf32>, vector<8x128xf32> -> vector<8x128xf32>
    %12 = arith.addf %9, %11 : vector<8x128xf32>
    %c0_13 = arith.constant 0 : index
    %c0_14 = arith.constant 0 : index
    %13 = vector.load %arg7[%c0_13, %c0_14] : memref<8x128xf32, #tpu.memory_space<vmem>>, vector<8x128xf32>
    tpu.vector_store %arg7[%c0_13, %c0_14], %12 {strides = array<i32>} : memref<8x128xf32, #tpu.memory_space<vmem>>, vector<8x128xf32>,
    %c0_15 = arith.constant 0 : index
    %c0_16 = arith.constant 0 : index
    %14 = vector.load %arg7[%c0_15, %c0_16] : memref<8x128xf32, #tpu.memory_space<vmem>>, vector<8x128xf32>
    %c0_17 = arith.constant 0 : index
    %c0_18 = arith.constant 0 : index
    %15 = vector.load %arg5[%c0_17, %c0_18] : memref<1x128xf32, #tpu.memory_space<vmem>>, vector<1x128xf32>
    %16 = vector.broadcast %15 : vector<1x128xf32> to vector<8x128xf32>
    %17 = arith.addf %14, %16 : vector<8x128xf32>
    %c0_19 = arith.constant 0 : index
    %c0_20 = arith.constant 0 : index
    %18 = vector.load %arg6[%c0_19, %c0_20] : memref<8x128xf32, #tpu.memory_space<vmem>>, vector<8x128xf32>
    tpu.vector_store %arg6[%c0_19, %c0_20], %17 {strides = array<i32>} : memref<8x128xf32, #tpu.memory_space<vmem>>, vector<8x128xf32>,
    return
  }
  func.func @transform_0(%arg0: i32) -> (i32, i32) {
    %c0_i32 = arith.constant 0 : i32
    %c0_i32_0 = arith.constant 0 : i32
    return %arg0, %c0_i32 : i32, i32
  }
  func.func @transform_1(%arg0: i32) -> (i32, i32) {
    %c0_i32 = arith.constant 0 : i32
    %c0_i32_0 = arith.constant 0 : i32
    %c0_i32_1 = arith.constant 0 : i32
    return %c0_i32, %c0_i32_0 : i32, i32
  }
  func.func @transform_2(%arg0: i32) -> (i32, i32) {
    %c0_i32 = arith.constant 0 : i32
    %c0_i32_0 = arith.constant 0 : i32
    %c0_i32_1 = arith.constant 0 : i32
    return %c0_i32, %c0_i32_0 : i32, i32
  }
  func.func @transform_3(%arg0: i32) -> (i32, i32) {
    %c0_i32 = arith.constant 0 : i32
    %c0_i32_0 = arith.constant 0 : i32
    %c0_i32_1 = arith.constant 0 : i32
    return %c0_i32, %c0_i32_0 : i32, i32
  }
  func.func @transform_4(%arg0: i32) -> (i32, i32) {
    %c0_i32 = arith.constant 0 : i32
    %c0_i32_0 = arith.constant 0 : i32
    %c0_i32_1 = arith.constant 0 : i32
    return %c0_i32, %c0_i32_0 : i32, i32
  }
  func.func @transform_5(%arg0: i32) -> (i32, i32) {
    %c0_i32 = arith.constant 0 : i32
    %c0_i32_0 = arith.constant 0 : i32
    return %arg0, %c0_i32 : i32, i32
  }
}

module attributes {stable_mosaic.version = 11 : i64} {
  func.func @kernel(%arg0: i32, %arg1: memref<8x128xf32, #tpu.memory_space<vmem>>, %arg2: memref<128x128xf32, #tpu.memory_space<vmem>>, %arg3: memref<1x128xf32, #tpu.memory_space<vmem>>, %arg4: memref<128x128xf32, #tpu.memory_space<vmem>>, %arg5: memref<1x128xf32, #tpu.memory_space<vmem>>, %arg6: memref<8x128xf32, #tpu.memory_space<vmem>>, %arg7: memref<8x128xf32, #tpu.memory_space<vmem>>) attributes {dimension_semantics = [#tpu.dimension_semantics<parallel>], iteration_bounds = array<i64: 1>, scalar_prefetch = 0 : i64, scratch_operands = 1 : i64, tpu.core_type = #tpu.core_type<tc>, window_params = [{transform_indices = @transform_0, window_bounds = array<i64: 8, 128>}, {pipeline_mode = #tpu.pipeline_mode<synchronous>, transform_indices = @transform_1, window_bounds = array<i64: 128, 128>}, {pipeline_mode = #tpu.pipeline_mode<synchronous>, transform_indices = @transform_2, window_bounds = array<i64: 1, 128>}, {pipeline_mode = #tpu.pipeline_mode<synchronous>, transform_indices = @transform_3, window_bounds = array<i64: 128, 128>}, {pipeline_mode = #tpu.pipeline_mode<synchronous>, transform_indices = @transform_4, window_bounds = array<i64: 1, 128>}, {transform_indices = @transform_5, window_bounds = array<i64: 8, 128>}]} {
    %c0 = arith.constant 0 : index
    %c0_0 = arith.constant 0 : index
    %0 = vector.load %arg1[%c0, %c0_0] : memref<8x128xf32, #tpu.memory_space<vmem>>, vector<8x128xf32>
    %cst = arith.constant 0.000000e+00 : f32
    %1 = vector.broadcast %cst : f32 to vector<8x128xf32>
    %c0_1 = arith.constant 0 : index
    %c0_2 = arith.constant 0 : index
    %2 = vector.load %arg7[%c0_1, %c0_2] : memref<8x128xf32, #tpu.memory_space<vmem>>, vector<8x128xf32>
    tpu.vector_store %arg7[%c0_1, %c0_2], %1 {strides = array<i32>} : memref<8x128xf32, #tpu.memory_space<vmem>>, vector<8x128xf32>,
    %c0_3 = arith.constant 0 : index
    %c0_4 = arith.constant 0 : index
    %3 = vector.load %arg2[%c0_3, %c0_4] : memref<128x128xf32, #tpu.memory_space<vmem>>, vector<128x128xf32>
    %cst_5 = arith.constant dense<0.000000e+00> : vector<8x128xf32>
    %4 = tpu.matmul %0, %3, %cst_5 {dimension_numbers = #tpu.dot_dimension_numbers<[1], [0], [0], [1], [0, 0, 1, 1], [], []>} : vector<8x128xf32>, vector<128x128xf32>, vector<8x128xf32> -> vector<8x128xf32>
    %c0_6 = arith.constant 0 : index
    %c0_7 = arith.constant 0 : index
    %5 = vector.load %arg3[%c0_6, %c0_7] : memref<1x128xf32, #tpu.memory_space<vmem>>, vector<1x128xf32>
    %6 = vector.broadcast %5 : vector<1x128xf32> to vector<8x128xf32>
    %7 = arith.addf %4, %6 : vector<8x128xf32>
    %8 = math.tanh %7 : vector<8x128xf32>
    %c0_8 = arith.constant 0 : index
    %c0_9 = arith.constant 0 : index
    %9 = vector.load %arg7[%c0_8, %c0_9] : memref<8x128xf32, #tpu.memory_space<vmem>>, vector<8x128xf32>
    %c0_10 = arith.constant 0 : index
    %c0_11 = arith.constant 0 : index
    %10 = vector.load %arg4[%c0_10, %c0_11] : memref<128x128xf32, #tpu.memory_space<vmem>>, vector<128x128xf32>
    %cst_12 = arith.constant dense<0.000000e+00> : vector<8x128xf32>
    %11 = tpu.matmul %8, %10, %cst_12 {dimension_numbers = #tpu.dot_dimension_numbers<[1], [0], [0], [1], [0, 0, 1, 1], [], []>} : vector<8x128xf32>, vector<128x128xf32>, vector<8x128xf32> -> vector<8x128xf32>
    %12 = arith.addf %9, %11 : vector<8x128xf32>
    %c0_13 = arith.constant 0 : index
    %c0_14 = arith.constant 0 : index
    %13 = vector.load %arg7[%c0_13, %c0_14] : memref<8x128xf32, #tpu.memory_space<vmem>>, vector<8x128xf32>
    tpu.vector_store %arg7[%c0_13, %c0_14], %12 {strides = array<i32>} : memref<8x128xf32, #tpu.memory_space<vmem>>, vector<8x128xf32>,
    %c0_15 = arith.constant 0 : index
    %c0_16 = arith.constant 0 : index
    %14 = vector.load %arg7[%c0_15, %c0_16] : memref<8x128xf32, #tpu.memory_space<vmem>>, vector<8x128xf32>
    %c0_17 = arith.constant 0 : index
    %c0_18 = arith.constant 0 : index
    %15 = vector.load %arg5[%c0_17, %c0_18] : memref<1x128xf32, #tpu.memory_space<vmem>>, vector<1x128xf32>
    %16 = vector.broadcast %15 : vector<1x128xf32> to vector<8x128xf32>
    %17 = arith.addf %14, %16 : vector<8x128xf32>
    %c0_19 = arith.constant 0 : index
    %c0_20 = arith.constant 0 : index
    %18 = vector.load %arg6[%c0_19, %c0_20] : memref<8x128xf32, #tpu.memory_space<vmem>>, vector<8x128xf32>
    tpu.vector_store %arg6[%c0_19, %c0_20], %17 {strides = array<i32>} : memref<8x128xf32, #tpu.memory_space<vmem>>, vector<8x128xf32>,
    return
  }
  func.func @transform_0(%arg0: i32) -> (i32, i32) {
    %c0_i32 = arith.constant 0 : i32
    %c0_i32_0 = arith.constant 0 : i32
    return %arg0, %c0_i32 : i32, i32
  }
  func.func @transform_1(%arg0: i32) -> (i32, i32) {
    %c0_i32 = arith.constant 0 : i32
    %c0_i32_0 = arith.constant 0 : i32
    %c0_i32_1 = arith.constant 0 : i32
    return %c0_i32, %c0_i32_0 : i32, i32
  }
  func.func @transform_2(%arg0: i32) -> (i32, i32) {
    %c0_i32 = arith.constant 0 : i32
    %c0_i32_0 = arith.constant 0 : i32
    %c0_i32_1 = arith.constant 0 : i32
    return %c0_i32, %c0_i32_0 : i32, i32
  }
  func.func @transform_3(%arg0: i32) -> (i32, i32) {
    %c0_i32 = arith.constant 0 : i32
    %c0_i32_0 = arith.constant 0 : i32
    %c0_i32_1 = arith.constant 0 : i32
    return %c0_i32, %c0_i32_0 : i32, i32
  }
  func.func @transform_4(%arg0: i32) -> (i32, i32) {
    %c0_i32 = arith.constant 0 : i32
    %c0_i32_0 = arith.constant 0 : i32
    %c0_i32_1 = arith.constant 0 : i32
    return %c0_i32, %c0_i32_0 : i32, i32
  }
  func.func @transform_5(%arg0: i32) -> (i32, i32) {
    %c0_i32 = arith.constant 0 : i32
    %c0_i32_0 = arith.constant 0 : i32
    return %arg0, %c0_i32 : i32, i32
  }
}

</mosaic_0001>

<bundles_post_ra>
// kernel: tpu_custom_call.1
= control target key start
LH: loop header
LB: loop body
LE: loop exit
PB: predicated region body
PF: predicated region fallthrough
CT: control target
= control target key end

     0   :  { %10 = vsyncpa [#allocation4], 0  ;;  %s563_s0 = inlined_call_operand.hbm [shape: f32[8,128], index: 0, kind: input, shape index: {}]   ;;  %s564_s1 = inlined_call_operand.hbm [shape: f32[128,128], index: 1, kind: input, shape index: {}]   ;;  %s565_s2 = inlined_call_operand.vmem [shape: f32[1,128], index: 2, kind: input, shape index: {}]   ;;  %s566_s3 = inlined_call_operand.hbm [shape: f32[128,128], index: 3, kind: input, shape index: {}]   ;;  %s567_s4 = inlined_call_operand.vmem [shape: f32[1,128], index: 4, kind: input, shape index: {}]   ;;  %s568_s5 = inlined_call_operand.hbm [shape: f32[8,128], index: 5, kind: output, shape index: {}]  }
   0x1   :  { %11 = vsyncpa [#allocation7], 0 }
   0x2   :  { %12 = vsyncpa [#allocation5], 0  ;;  %s473_s18 = smov [#allocation6]  }
   0x3   :  { %s28_s19 = sshll.u32 %s473_s18, 4  ;;  %s29_s19 = int_to_ptr.vmem [resolvable:$true] %s28_s19 }
   0x4   :  { %s395_s20 = scalar_lea.vmem %s29_s19, 2048  ;;  %p400_p1 = scmp.lt.s32.totalorder %s29_s19, %s29_s19 }
   0x5   :  { %p396_p0 = scmp.ne.s32.totalorder %s29_s19, %s395_s20  ;;  %p401_p2 = scmp.lt.s32.totalorder %s395_s20, %s395_s20 }
   0x7   :  { %p402_p3 = por %p401_p2, %p400_p1 }
   0x9   :  { %p403_p4 = pnand %p402_p3, %p396_p0 }
   0xb   :  { %406 = shalt.err (!%p403_p4)
}
   0xc   :  { %s474_s21 = smov 128   ;;  %s475_s22 = smov 8  }
   0xd   :  { %34 = dma.hbm_to_vmem [thread:$0]  %s564_s1, 2048, %s29_s19, [#allocation7], %s474_s21, %s474_s21, %s475_s22  }
   0xe   :  { %s476_s25 = smov [#allocation3]   ;;  %s477_s27 = smov [#allocation8]  }
   0xf   :  { %s19_s26 = sshll.u32 %s476_s25, 4  ;;  %s42_s28 = sshll.u32 %s477_s27, 4  ;;  %s20_s26 = int_to_ptr.vmem [resolvable:$true] %s19_s26  ;;  %s43_s28 = int_to_ptr.vmem [resolvable:$true] %s42_s28 }
  0x10   :  { %s415_s29 = scalar_lea.vmem %s20_s26, 128  ;;  %p420_p6 = scmp.lt.s32.totalorder %s20_s26, %s20_s26 }
  0x11   :  { %p416_p5 = scmp.ne.s32.totalorder %s20_s26, %s415_s29  ;;  %p421_p7 = scmp.lt.s32.totalorder %s415_s29, %s415_s29 }
  0x13   :  { %p422_p8 = por %p421_p7, %p420_p6 }
  0x15   :  { %p423_p9 = pnand %p422_p8, %p416_p5 }
  0x17   :  { %426 = shalt.err (!%p423_p9)
}
  0x18   :  { %22 = dma.hbm_to_vmem [thread:$0]  %s563_s0, 128, %s20_s26, [#allocation4]  }
  0x19   :  { %s435_s7 = scalar_lea.vmem %s43_s28, 2048  ;;  %p440_p11 = scmp.lt.s32.totalorder %s43_s28, %s43_s28 }
  0x1a   :  { %p436_p10 = scmp.ne.s32.totalorder %s43_s28, %s435_s7  ;;  %p441_p12 = scmp.lt.s32.totalorder %s435_s7, %s435_s7 }
  0x1c   :  { %p442_p13 = por %p441_p12, %p440_p11 }
  0x1e   :  { %p443_p0 = pnand %p442_p13, %p436_p10 }
  0x20   :  { %446 = shalt.err (!%p443_p0)
}
  0x21   :  { %48 = dma.hbm_to_vmem [thread:$0]  %s566_s3, 2048, %s43_s28, [#allocation7], %s474_s21, %s474_s21, %s475_s22  }
  0x22   :  { %467 = dma.done.wait [#allocation4], 128  }
  0x23   :  { %468 = vsyncadd [#allocation4], 4294967168 }
  0x24   :  { %469 = dma.done.wait [#allocation7], 4096  }
  0x25   :  { %470 = vsyncadd [#allocation7], 4294963200  ;;  %v478_v0 = vmov 0.0   ;;  %vm479_vm0 = vmmov 0   ;;  %v77_v1 = vld [vmem:[#allocation6 + $0x78] sm:$0xff]  ;;  %v76_v2 = vld [vmem:[#allocation6 + $0x70] sm:$0xff] }
  0x26   :  { %307 = vmatprep.subr.mxu0 %v478_v0  ;;  %339 = vmatprep.mubr.msk.f32.mxu0 %vm479_vm0, %v478_v0  ;;  %v75_v3 = vld [vmem:[#allocation6 + $0x68] sm:$0xff]  ;;  %v74_v4 = vld [vmem:[#allocation6 + $0x60] sm:$0xff]  ;;  %v172_v5 = vld [vmem:[#allocation8 + $0x78] sm:$0xff]  ;;  %s480_s11 = smov [#allocation9]  }
  0x27   :  { %342 = vmatprep.subr.mxu1 %v478_v0  ;;  %374 = vmatprep.mubr.msk.f32.mxu1 %vm479_vm0, %v478_v0  ;;  %v73_v6 = vld [vmem:[#allocation6 + $0x58] sm:$0xff]  ;;  %v171_v7 = vld [vmem:[#allocation8 + $0x70] sm:$0xff]  ;;  %v170_v8 = vld [vmem:[#allocation8 + $0x68] sm:$0xff]  ;;  %s261_s12 = sshll.u32 %s480_s11, 4  ;;  %s262_s12 = int_to_ptr.vmem [resolvable:$true] %s261_s12 }
  0x28   :  { %308 = vmatpush3.msra.mxu0 %v77_v1  ;;  %343 = vmatpush3.msra.mxu1 %v172_v5  ;;  %v72_v9 = vld [vmem:[#allocation6 + $0x50] sm:$0xff]  ;;  %v169_v10 = vld [vmem:[#allocation8 + $0x60] sm:$0xff]  ;;  %v71_v11 = vld [vmem:[#allocation6 + $0x48] sm:$0xff]  ;;  %s447_s13 = scalar_lea.vmem %s262_s12, 128  ;;  %p452_p2 = scmp.lt.s32.totalorder %s262_s12, %s262_s12 }
  0x29   :  { %309 = vmatprep.subr.mxu0 %v478_v0  ;;  %344 = vmatprep.subr.mxu1 %v478_v0  ;;  %v168_v12 = vld [vmem:[#allocation8 + $0x58] sm:$0xff]  ;;  %v70_v13 = vld [vmem:[#allocation6 + $0x40] sm:$0xff]  ;;  %v167_v14 = vld [vmem:[#allocation8 + $0x50] sm:$0xff]  ;;  %p448_p1 = scmp.ne.s32.totalorder %s262_s12, %s447_s13  ;;  %p453_p3 = scmp.lt.s32.totalorder %s447_s13, %s447_s13 }
  0x2a   :  { %310 = vmatpush3.msra.mxu0 %v76_v2  ;;  %345 = vmatpush3.msra.mxu1 %v171_v7  ;;  %v69_v15 = vld [vmem:[#allocation6 + $0x38] sm:$0xff]  ;;  %v166_v16 = vld [vmem:[#allocation8 + $0x48] sm:$0xff]  ;;  %v68_v17 = vld [vmem:[#allocation6 + $0x30] sm:$0xff] }
  0x2b   :  { %311 = vmatprep.subr.mxu0 %v478_v0  ;;  %346 = vmatprep.subr.mxu1 %v478_v0  ;;  %v67_v18 = vld [vmem:[#allocation6 + $0x28] sm:$0xff]  ;;  %v66_v19 = vld [vmem:[#allocation6 + $0x20] sm:$0xff]  ;;  %v65_v20 = vld [vmem:[#allocation6 + $0x18] sm:$0xff]  ;;  %p454_p4 = por %p453_p3, %p452_p2 }
  0x2c   :  { %312 = vmatpush3.msra.mxu0 %v75_v3  ;;  %347 = vmatpush3.msra.mxu1 %v170_v8  ;;  %v64_v21 = vld [vmem:[#allocation6 + $0x10] sm:$0xff]  ;;  %v63_v22 = vld [vmem:[#allocation6 + $0x8] sm:$0xff]  ;;  %v62_v23 = vld [vmem:[#allocation6] sm:$0xff] }
  0x2d   :  { %313 = vmatprep.subr.mxu0 %v478_v0  ;;  %348 = vmatprep.subr.mxu1 %v478_v0  ;;  %v60_v24 = vld [vmem:[#allocation3] sm:$0xff]  ;;  %v165_v25 = vld [vmem:[#allocation8 + $0x40] sm:$0xff]  ;;  %v163_v27 = vld [vmem:[#allocation8 + $0x30] sm:$0xff]  ;;  %p455_p5 = pnand %p454_p4, %p448_p1 }
  0x2e   :  { %314 = vmatpush3.msra.mxu0 %v74_v4  ;;  %349 = vmatpush3.msra.mxu1 %v169_v10  ;;  %v164_v26 = vld [vmem:[#allocation8 + $0x38] sm:$0xff]  ;;  %v162_v28 = vld [vmem:[#allocation8 + $0x28] sm:$0xff]  ;;  %v161_v29 = vld [vmem:[#allocation8 + $0x20] sm:$0xff] }
  0x2f   :  { %315 = vmatprep.subr.mxu0 %v478_v0  ;;  %350 = vmatprep.subr.mxu1 %v478_v0  ;;  %v160_v30 = vld [vmem:[#allocation8 + $0x18] sm:$0xff]  ;;  %v159_v31 = vld [vmem:[#allocation8 + $0x10] sm:$0xff]  ;;  %v158_v32 = vld [vmem:[#allocation8 + $0x8] sm:$0xff] }
  0x30   :  { %316 = vmatpush3.msra.mxu0 %v73_v6  ;;  %351 = vmatpush3.msra.mxu1 %v168_v12  ;;  %v157_v33 = vld [vmem:[#allocation8] sm:$0xff]  ;;  %v271_v34 = vld [vmem:[%s565_s2] ss:$0 sm:$0xff] }
  0x31   :  { %317 = vmatprep.subr.mxu0 %v478_v0  ;;  %352 = vmatprep.subr.mxu1 %v478_v0  ;;  %v272_v39 = vld [vmem:[%s567_s4] ss:$0 sm:$0xff] }
  0x32   :  { %318 = vmatpush3.msra.mxu0 %v72_v9  ;;  %353 = vmatpush3.msra.mxu1 %v167_v14 }
  0x33   :  { %319 = vmatprep.subr.mxu0 %v478_v0  ;;  %354 = vmatprep.subr.mxu1 %v478_v0 }
  0x34   :  { %320 = vmatpush3.msra.mxu0 %v71_v11  ;;  %355 = vmatpush3.msra.mxu1 %v166_v16 }
  0x35   :  { %321 = vmatprep.subr.mxu0 %v478_v0  ;;  %356 = vmatprep.subr.mxu1 %v478_v0 }
  0x36   :  { %322 = vmatpush3.msra.mxu0 %v70_v13  ;;  %357 = vmatpush3.msra.mxu1 %v165_v25 }
  0x37   :  { %323 = vmatprep.subr.mxu0 %v478_v0  ;;  %358 = vmatprep.subr.mxu1 %v478_v0 }
  0x38   :  { %324 = vmatpush3.msra.mxu0 %v69_v15  ;;  %359 = vmatpush3.msra.mxu1 %v164_v26 }
  0x39   :  { %325 = vmatprep.subr.mxu0 %v478_v0  ;;  %360 = vmatprep.subr.mxu1 %v478_v0 }
  0x3a   :  { %326 = vmatpush3.msra.mxu0 %v68_v17  ;;  %361 = vmatpush3.msra.mxu1 %v163_v27 }
  0x3b   :  { %327 = vmatprep.subr.mxu0 %v478_v0  ;;  %362 = vmatprep.subr.mxu1 %v478_v0 }
  0x3c   :  { %328 = vmatpush3.msra.mxu0 %v67_v18  ;;  %363 = vmatpush3.msra.mxu1 %v162_v28 }
  0x3d   :  { %329 = vmatprep.subr.mxu0 %v478_v0  ;;  %364 = vmatprep.subr.mxu1 %v478_v0 }
  0x3e   :  { %330 = vmatpush3.msra.mxu0 %v66_v19  ;;  %365 = vmatpush3.msra.mxu1 %v161_v29 }
  0x3f   :  { %331 = vmatprep.subr.mxu0 %v478_v0  ;;  %366 = vmatprep.subr.mxu1 %v478_v0 }
  0x40   :  { %332 = vmatpush3.msra.mxu0 %v65_v20  ;;  %367 = vmatpush3.msra.mxu1 %v160_v30 }
  0x41   :  { %333 = vmatprep.subr.mxu0 %v478_v0  ;;  %368 = vmatprep.subr.mxu1 %v478_v0 }
  0x42   :  { %334 = vmatpush3.msra.mxu0 %v64_v21  ;;  %369 = vmatpush3.msra.mxu1 %v159_v31 }
  0x43   :  { %335 = vmatprep.subr.mxu0 %v478_v0  ;;  %370 = vmatprep.subr.mxu1 %v478_v0 }
  0x44   :  { %336 = vmatpush3.msra.mxu0 %v63_v22  ;;  %371 = vmatpush3.msra.mxu1 %v158_v32 }
  0x45   :  { %337 = vmatprep.subr.mxu0 %v478_v0  ;;  %372 = vmatprep.subr.mxu1 %v478_v0 }
  0x46   :  { %338 = vmatpush3.msra.mxu0 %v62_v23  ;;  %373 = vmatpush3.msra.mxu1 %v157_v33 }
  0x47   :  { %340 = vmatmul.mubr.f32.vlgmr.msra.gmra.mxu0 %v60_v24 }
 0x107   :  { %v151_v35 = vpop.f32.mrf.mxu0 }
 0x108   :  { %v152_v36 = vadd.f32 %v271_v34, %v151_v35 }
 0x109   :  { %v341_v37 = vpop.f32.mrf.mxu0 }
 0x10a   :  { %385 = vtanh.f32 %v152_v36 }
 0x117   :  { %v386_v38 = vpop.eup %385 }
 0x118   :  { %375 = vmatmul.mubr.f32.vlgmr.msra.gmra.mxu1 %v386_v38 }
 0x1d8   :  { %v239_v40 = vpop.f32.mrf.mxu1 }
 0x1d9   :  { %v253_v41 = vadd.f32 %v272_v39, %v239_v40 }
 0x1da   :  { %v376_v42 = vpop.f32.mrf.mxu1 }
 0x1db   :  { %254 = vst [vmem:[#allocation9] sm:$0xff] %v253_v41 }
 0x1dc   :  { %458 = shalt.err (!%p455_p5)
}
 0x1dd   :  { %264 = dma.vmem_to_hbm [thread:$0]  %s262_s12, 128, %s568_s5, [#allocation5]  }
 0x1de   :  { %471 = dma.done.wait [#allocation5], 128  }
 0x1df   :  { %472 = vsyncadd [#allocation5], 4294967168 }
 0x1e0   :  { %268 = vsyncpa [#allocation4], 1 }
 0x1e1   :  { %269 = vsyncpa [#allocation7], 1 }
 0x1e2   :  { %270 = vsyncpa [#allocation5], 1 }

// kernel: tpu_custom_call.1
= control target key start
LH: loop header
LB: loop body
LE: loop exit
PB: predicated region body
PF: predicated region fallthrough
CT: control target
= control target key end

     0   :  { %10 = vsyncpa [#allocation4], 0  ;;  %s563_s0 = inlined_call_operand.hbm [shape: f32[8,128], index: 0, kind: input, shape index: {}]   ;;  %s564_s1 = inlined_call_operand.hbm [shape: f32[128,128], index: 1, kind: input, shape index: {}]   ;;  %s565_s2 = inlined_call_operand.vmem [shape: f32[1,128], index: 2, kind: input, shape index: {}]   ;;  %s566_s3 = inlined_call_operand.hbm [shape: f32[128,128], index: 3, kind: input, shape index: {}]   ;;  %s567_s4 = inlined_call_operand.vmem [shape: f32[1,128], index: 4, kind: input, shape index: {}]   ;;  %s568_s5 = inlined_call_operand.hbm [shape: f32[8,128], index: 5, kind: output, shape index: {}]  }
   0x1   :  { %11 = vsyncpa [#allocation7], 0 }
   0x2   :  { %12 = vsyncpa [#allocation5], 0  ;;  %s473_s18 = smov [#allocation6]  }
   0x3   :  { %s28_s19 = sshll.u32 %s473_s18, 4  ;;  %s29_s19 = int_to_ptr.vmem [resolvable:$true] %s28_s19 }
   0x4   :  { %s395_s20 = scalar_lea.vmem %s29_s19, 2048  ;;  %p400_p1 = scmp.lt.s32.totalorder %s29_s19, %s29_s19 }
   0x5   :  { %p396_p0 = scmp.ne.s32.totalorder %s29_s19, %s395_s20  ;;  %p401_p2 = scmp.lt.s32.totalorder %s395_s20, %s395_s20 }
   0x7   :  { %p402_p3 = por %p401_p2, %p400_p1 }
   0x9   :  { %p403_p4 = pnand %p402_p3, %p396_p0 }
   0xb   :  { %406 = shalt.err (!%p403_p4)
}
   0xc   :  { %s474_s21 = smov 128   ;;  %s475_s22 = smov 8  }
   0xd   :  { %34 = dma.hbm_to_vmem [thread:$0]  %s564_s1, 2048, %s29_s19, [#allocation7], %s474_s21, %s474_s21, %s475_s22  }
   0xe   :  { %s476_s25 = smov [#allocation3]   ;;  %s477_s27 = smov [#allocation8]  }
   0xf   :  { %s19_s26 = sshll.u32 %s476_s25, 4  ;;  %s42_s28 = sshll.u32 %s477_s27, 4  ;;  %s20_s26 = int_to_ptr.vmem [resolvable:$true] %s19_s26  ;;  %s43_s28 = int_to_ptr.vmem [resolvable:$true] %s42_s28 }
  0x10   :  { %s415_s29 = scalar_lea.vmem %s20_s26, 128  ;;  %p420_p6 = scmp.lt.s32.totalorder %s20_s26, %s20_s26 }
  0x11   :  { %p416_p5 = scmp.ne.s32.totalorder %s20_s26, %s415_s29  ;;  %p421_p7 = scmp.lt.s32.totalorder %s415_s29, %s415_s29 }
  0x13   :  { %p422_p8 = por %p421_p7, %p420_p6 }
  0x15   :  { %p423_p9 = pnand %p422_p8, %p416_p5 }
  0x17   :  { %426 = shalt.err (!%p423_p9)
}
  0x18   :  { %22 = dma.hbm_to_vmem [thread:$0]  %s563_s0, 128, %s20_s26, [#allocation4]  }
  0x19   :  { %s435_s7 = scalar_lea.vmem %s43_s28, 2048  ;;  %p440_p11 = scmp.lt.s32.totalorder %s43_s28, %s43_s28 }
  0x1a   :  { %p436_p10 = scmp.ne.s32.totalorder %s43_s28, %s435_s7  ;;  %p441_p12 = scmp.lt.s32.totalorder %s435_s7, %s435_s7 }
  0x1c   :  { %p442_p13 = por %p441_p12, %p440_p11 }
  0x1e   :  { %p443_p0 = pnand %p442_p13, %p436_p10 }
  0x20   :  { %446 = shalt.err (!%p443_p0)
}
  0x21   :  { %48 = dma.hbm_to_vmem [thread:$0]  %s566_s3, 2048, %s43_s28, [#allocation7], %s474_s21, %s474_s21, %s475_s22  }
  0x22   :  { %467 = dma.done.wait [#allocation4], 128  }
  0x23   :  { %468 = vsyncadd [#allocation4], 4294967168 }
  0x24   :  { %469 = dma.done.wait [#allocation7], 4096  }
  0x25   :  { %470 = vsyncadd [#allocation7], 4294963200  ;;  %v478_v0 = vmov 0.0   ;;  %vm479_vm0 = vmmov 0   ;;  %v77_v1 = vld [vmem:[#allocation6 + $0x78] sm:$0xff]  ;;  %v76_v2 = vld [vmem:[#allocation6 + $0x70] sm:$0xff] }
  0x26   :  { %307 = vmatprep.subr.mxu0 %v478_v0  ;;  %339 = vmatprep.mubr.msk.f32.mxu0 %vm479_vm0, %v478_v0  ;;  %v75_v3 = vld [vmem:[#allocation6 + $0x68] sm:$0xff]  ;;  %v74_v4 = vld [vmem:[#allocation6 + $0x60] sm:$0xff]  ;;  %v172_v5 = vld [vmem:[#allocation8 + $0x78] sm:$0xff]  ;;  %s480_s11 = smov [#allocation9]  }
  0x27   :  { %342 = vmatprep.subr.mxu1 %v478_v0  ;;  %374 = vmatprep.mubr.msk.f32.mxu1 %vm479_vm0, %v478_v0  ;;  %v73_v6 = vld [vmem:[#allocation6 + $0x58] sm:$0xff]  ;;  %v171_v7 = vld [vmem:[#allocation8 + $0x70] sm:$0xff]  ;;  %v170_v8 = vld [vmem:[#allocation8 + $0x68] sm:$0xff]  ;;  %s261_s12 = sshll.u32 %s480_s11, 4  ;;  %s262_s12 = int_to_ptr.vmem [resolvable:$true] %s261_s12 }
  0x28   :  { %308 = vmatpush3.msra.mxu0 %v77_v1  ;;  %343 = vmatpush3.msra.mxu1 %v172_v5  ;;  %v72_v9 = vld [vmem:[#allocation6 + $0x50] sm:$0xff]  ;;  %v169_v10 = vld [vmem:[#allocation8 + $0x60] sm:$0xff]  ;;  %v71_v11 = vld [vmem:[#allocation6 + $0x48] sm:$0xff]  ;;  %s447_s13 = scalar_lea.vmem %s262_s12, 128  ;;  %p452_p2 = scmp.lt.s32.totalorder %s262_s12, %s262_s12 }
  0x29   :  { %309 = vmatprep.subr.mxu0 %v478_v0  ;;  %344 = vmatprep.subr.mxu1 %v478_v0  ;;  %v168_v12 = vld [vmem:[#allocation8 + $0x58] sm:$0xff]  ;;  %v70_v13 = vld [vmem:[#allocation6 + $0x40] sm:$0xff]  ;;  %v167_v14 = vld [vmem:[#allocation8 + $0x50] sm:$0xff]  ;;  %p448_p1 = scmp.ne.s32.totalorder %s262_s12, %s447_s13  ;;  %p453_p3 = scmp.lt.s32.totalorder %s447_s13, %s447_s13 }
  0x2a   :  { %310 = vmatpush3.msra.mxu0 %v76_v2  ;;  %345 = vmatpush3.msra.mxu1 %v171_v7  ;;  %v69_v15 = vld [vmem:[#allocation6 + $0x38] sm:$0xff]  ;;  %v166_v16 = vld [vmem:[#allocation8 + $0x48] sm:$0xff]  ;;  %v68_v17 = vld [vmem:[#allocation6 + $0x30] sm:$0xff] }
  0x2b   :  { %311 = vmatprep.subr.mxu0 %v478_v0  ;;  %346 = vmatprep.subr.mxu1 %v478_v0  ;;  %v67_v18 = vld [vmem:[#allocation6 + $0x28] sm:$0xff]  ;;  %v66_v19 = vld [vmem:[#allocation6 + $0x20] sm:$0xff]  ;;  %v65_v20 = vld [vmem:[#allocation6 + $0x18] sm:$0xff]  ;;  %p454_p4 = por %p453_p3, %p452_p2 }
  0x2c   :  { %312 = vmatpush3.msra.mxu0 %v75_v3  ;;  %347 = vmatpush3.msra.mxu1 %v170_v8  ;;  %v64_v21 = vld [vmem:[#allocation6 + $0x10] sm:$0xff]  ;;  %v63_v22 = vld [vmem:[#allocation6 + $0x8] sm:$0xff]  ;;  %v62_v23 = vld [vmem:[#allocation6] sm:$0xff] }
  0x2d   :  { %313 = vmatprep.subr.mxu0 %v478_v0  ;;  %348 = vmatprep.subr.mxu1 %v478_v0  ;;  %v60_v24 = vld [vmem:[#allocation3] sm:$0xff]  ;;  %v165_v25 = vld [vmem:[#allocation8 + $0x40] sm:$0xff]  ;;  %v163_v27 = vld [vmem:[#allocation8 + $0x30] sm:$0xff]  ;;  %p455_p5 = pnand %p454_p4, %p448_p1 }
  0x2e   :  { %314 = vmatpush3.msra.mxu0 %v74_v4  ;;  %349 = vmatpush3.msra.mxu1 %v169_v10  ;;  %v164_v26 = vld [vmem:[#allocation8 + $0x38] sm:$0xff]  ;;  %v162_v28 = vld [vmem:[#allocation8 + $0x28] sm:$0xff]  ;;  %v161_v29 = vld [vmem:[#allocation8 + $0x20] sm:$0xff] }
  0x2f   :  { %315 = vmatprep.subr.mxu0 %v478_v0  ;;  %350 = vmatprep.subr.mxu1 %v478_v0  ;;  %v160_v30 = vld [vmem:[#allocation8 + $0x18] sm:$0xff]  ;;  %v159_v31 = vld [vmem:[#allocation8 + $0x10] sm:$0xff]  ;;  %v158_v32 = vld [vmem:[#allocation8 + $0x8] sm:$0xff] }
  0x30   :  { %316 = vmatpush3.msra.mxu0 %v73_v6  ;;  %351 = vmatpush3.msra.mxu1 %v168_v12  ;;  %v157_v33 = vld [vmem:[#allocation8] sm:$0xff]  ;;  %v271_v34 = vld [vmem:[%s565_s2] ss:$0 sm:$0xff] }
  0x31   :  { %317 = vmatprep.subr.mxu0 %v478_v0  ;;  %352 = vmatprep.subr.mxu1 %v478_v0  ;;  %v272_v39 = vld [vmem:[%s567_s4] ss:$0 sm:$0xff] }
  0x32   :  { %318 = vmatpush3.msra.mxu0 %v72_v9  ;;  %353 = vmatpush3.msra.mxu1 %v167_v14 }
  0x33   :  { %319 = vmatprep.subr.mxu0 %v478_v0  ;;  %354 = vmatprep.subr.mxu1 %v478_v0 }
  0x34   :  { %320 = vmatpush3.msra.mxu0 %v71_v11  ;;  %355 = vmatpush3.msra.mxu1 %v166_v16 }
  0x35   :  { %321 = vmatprep.subr.mxu0 %v478_v0  ;;  %356 = vmatprep.subr.mxu1 %v478_v0 }
  0x36   :  { %322 = vmatpush3.msra.mxu0 %v70_v13  ;;  %357 = vmatpush3.msra.mxu1 %v165_v25 }
  0x37   :  { %323 = vmatprep.subr.mxu0 %v478_v0  ;;  %358 = vmatprep.subr.mxu1 %v478_v0 }
  0x38   :  { %324 = vmatpush3.msra.mxu0 %v69_v15  ;;  %359 = vmatpush3.msra.mxu1 %v164_v26 }
  0x39   :  { %325 = vmatprep.subr.mxu0 %v478_v0  ;;  %360 = vmatprep.subr.mxu1 %v478_v0 }
  0x3a   :  { %326 = vmatpush3.msra.mxu0 %v68_v17  ;;  %361 = vmatpush3.msra.mxu1 %v163_v27 }
  0x3b   :  { %327 = vmatprep.subr.mxu0 %v478_v0  ;;  %362 = vmatprep.subr.mxu1 %v478_v0 }
  0x3c   :  { %328 = vmatpush3.msra.mxu0 %v67_v18  ;;  %363 = vmatpush3.msra.mxu1 %v162_v28 }
  0x3d   :  { %329 = vmatprep.subr.mxu0 %v478_v0  ;;  %364 = vmatprep.subr.mxu1 %v478_v0 }
  0x3e   :  { %330 = vmatpush3.msra.mxu0 %v66_v19  ;;  %365 = vmatpush3.msra.mxu1 %v161_v29 }
  0x3f   :  { %331 = vmatprep.subr.mxu0 %v478_v0  ;;  %366 = vmatprep.subr.mxu1 %v478_v0 }
  0x40   :  { %332 = vmatpush3.msra.mxu0 %v65_v20  ;;  %367 = vmatpush3.msra.mxu1 %v160_v30 }
  0x41   :  { %333 = vmatprep.subr.mxu0 %v478_v0  ;;  %368 = vmatprep.subr.mxu1 %v478_v0 }
  0x42   :  { %334 = vmatpush3.msra.mxu0 %v64_v21  ;;  %369 = vmatpush3.msra.mxu1 %v159_v31 }
  0x43   :  { %335 = vmatprep.subr.mxu0 %v478_v0  ;;  %370 = vmatprep.subr.mxu1 %v478_v0 }
  0x44   :  { %336 = vmatpush3.msra.mxu0 %v63_v22  ;;  %371 = vmatpush3.msra.mxu1 %v158_v32 }
  0x45   :  { %337 = vmatprep.subr.mxu0 %v478_v0  ;;  %372 = vmatprep.subr.mxu1 %v478_v0 }
  0x46   :  { %338 = vmatpush3.msra.mxu0 %v62_v23  ;;  %373 = vmatpush3.msra.mxu1 %v157_v33 }
  0x47   :  { %340 = vmatmul.mubr.f32.vlgmr.msra.gmra.mxu0 %v60_v24 }
 0x107   :  { %v151_v35 = vpop.f32.mrf.mxu0 }
 0x108   :  { %v152_v36 = vadd.f32 %v271_v34, %v151_v35 }
 0x109   :  { %v341_v37 = vpop.f32.mrf.mxu0 }
 0x10a   :  { %385 = vtanh.f32 %v152_v36 }
 0x117   :  { %v386_v38 = vpop.eup %385 }
 0x118   :  { %375 = vmatmul.mubr.f32.vlgmr.msra.gmra.mxu1 %v386_v38 }
 0x1d8   :  { %v239_v40 = vpop.f32.mrf.mxu1 }
 0x1d9   :  { %v253_v41 = vadd.f32 %v272_v39, %v239_v40 }
 0x1da   :  { %v376_v42 = vpop.f32.mrf.mxu1 }
 0x1db   :  { %254 = vst [vmem:[#allocation9] sm:$0xff] %v253_v41 }
 0x1dc   :  { %458 = shalt.err (!%p455_p5)
}
 0x1dd   :  { %264 = dma.vmem_to_hbm [thread:$0]  %s262_s12, 128, %s568_s5, [#allocation5]  }
 0x1de   :  { %471 = dma.done.wait [#allocation5], 128  }
 0x1df   :  { %472 = vsyncadd [#allocation5], 4294967168 }
 0x1e0   :  { %268 = vsyncpa [#allocation4], 1 }
 0x1e1   :  { %269 = vsyncpa [#allocation7], 1 }
 0x1e2   :  { %270 = vsyncpa [#allocation5], 1 }

</bundles_post_ra>
